<compile_context>
chip_gen: v6e
topology: v6e:2x2x1
jax: 0.10.0
libtpu: 0.0.40
codegen_flags: <defaults>
</compile_context>

<pallas_src>
import jax
import jax.numpy as jnp
from jax.experimental import pallas as pl
from jax.experimental.pallas import tpu as pltpu

_LANE = 128
_VMEM_LIMIT_BYTES = 32 * 1024 * 1024      # safe on v5e/v6e/v7x
_X_TILE_BUDGET_BYTES = 12 * 1024 * 1024   # double-buffered x tile budget


def _round_up(n, m):
    return ((n + m - 1) // m) * m


def _choose_batch_tile(B, F, itemsize, max_tile=2048):
    """Largest 8-aligned batch tile whose double-buffered x stream fits budget."""
    tb = _X_TILE_BUDGET_BYTES // max(1, 2 * F * itemsize)
    tb = max(8, min(max_tile, tb))
    tb = (tb // 8) * 8
    tb = min(tb, _round_up(B, 8))       # don't tile wider than the batch
    return max(8, tb)


def dense_kernel(x_ref, w1_ref, b1_ref, w2_ref, b2_ref, o_ref):
    """Fused MLP tile: out = sum(relu(x @ w1 + b1) * w2, -1) + b2.

    x_ref : (TB, F)   batch tile of flattened input
    w1_ref: (F, Hp)   first-layer weight (transposed, H padded to 128 lanes)
    b1_ref: (1, Hp)   first-layer bias (zero-padded)
    w2_ref: (1, Hp)   second-layer weight row (zero-padded)
    b2_ref: (1,)      second-layer bias, SMEM scalar
    o_ref : (TB, 1)   output tile (pre-squeeze)
    """
    x = x_ref[...]

    # h = relu(x @ W1 + b1)  -> MXU matmul (f32 accumulate) + VPU max
    h = jnp.dot(x, w1_ref[...], preferred_element_type=jnp.float32)
    h = jnp.maximum(h + b1_ref[...], 0.0)

    # Second layer has a single output unit: do it as a VPU multiply + lane
    # reduce instead of an N=1 MXU matmul.
    out = jnp.sum(h * w2_ref[...], axis=-1, keepdims=True) + b2_ref[0]

    o_ref[...] = out.astype(o_ref.dtype)


def prepare_dense_params(w1, b1, w2, b2):
    """One-time conversion from torch layout to kernel layout (outside hot path).

    w1: (H, F), b1: (H,), w2: (1, H), b2: (1,)
    ->  w1_t: (F, Hp), b1_p: (1, Hp), w2_p: (1, Hp), b2_p: (1,)   with Hp = 128-aligned H.
    Zero padding of the hidden dim is exact (relu(0+0)=0, padded w2 columns are 0).
    """
    H, F = w1.shape
    Hp = max(_LANE, _round_up(H, _LANE))
    w1_t = jnp.zeros((F, Hp), w1.dtype).at[:, :H].set(w1.T)
    b1_p = jnp.zeros((1, Hp), b1.dtype).at[0, :H].set(b1)
    w2_p = jnp.zeros((1, Hp), w2.dtype).at[0, :H].set(w2.reshape(-1))
    b2_p = b2.reshape((1,))
    return w1_t, b1_p, w2_p, b2_p


def dense_forward(x, w1_t, b1_p, w2_p, b2_p):
    """Pallas forward reproducing Dense.forward with p=None (no dropout).

    x     : (B, ...) — flattened to (B, F) like torch.flatten(x, 1)
    params: kernel-layout weights from prepare_dense_params
    returns (B,) — torch.squeeze(result, dim=1)
    """
    B = x.shape[0]
    x2d = x.reshape(B, -1)
    F = x2d.shape[1]
    Hp = w1_t.shape[1]

    TB = _choose_batch_tile(B, F, jnp.dtype(x2d.dtype).itemsize)
    Bp = _round_up(B, TB)
    if Bp != B:
        x2d = jnp.pad(x2d, ((0, Bp - B), (0, 0)))   # zero rows, sliced off below

    grid = (Bp // TB,)

    out = pl.pallas_call(
        dense_kernel,
        out_shape=jax.ShapeDtypeStruct((Bp, 1), x2d.dtype),
        grid=grid,
        in_specs=[
            pl.BlockSpec((TB, F), lambda i: (i, 0)),          # x: streamed per tile
            pl.BlockSpec((F, Hp), lambda i: (0, 0)),          # w1: VMEM resident
            pl.BlockSpec((1, Hp), lambda i: (0, 0)),          # b1: VMEM resident
            pl.BlockSpec((1, Hp), lambda i: (0, 0)),          # w2 row: VMEM resident
            pl.BlockSpec(memory_space=pltpu.MemorySpace.SMEM),  # b2 scalar in SMEM
        ],
        out_specs=pl.BlockSpec((TB, 1), lambda i: (i, 0)),
        compiler_params=pltpu.CompilerParams(
            dimension_semantics=("parallel",),        # batch axis: no reduction
            vmem_limit_bytes=_VMEM_LIMIT_BYTES,
        ),
    )(x2d, w1_t, b1_p, w2_p, b2_p)

    # TODO(synk): lane-dense output layout (batch mapped to lanes) skipped; the
    # output stream is ~F x smaller than the input stream, so masked (TB,1)
    # stores are negligible here.
    return out[:B, 0]                                  # torch.squeeze(result, 1)


def init_dense_params(key, ndim, hidden_units=32, dtype=jnp.float32):
    """Deterministic PyTorch-style (Kaiming-uniform-ish) init for the two Linears."""
    if isinstance(ndim, int):
        inputs = ndim
    else:
        inputs = 1
        for d in ndim:
            inputs *= int(d)

    k1, k2, k3, k4 = jax.random.split(key, 4)
    bound1 = 1.0 / (inputs ** 0.5)
    w1 = jax.random.uniform(k1, (hidden_units, inputs), dtype, -bound1, bound1)
    b1 = jax.random.uniform(k2, (hidden_units,), dtype, -bound1, bound1)
    bound2 = 1.0 / (hidden_units ** 0.5)
    w2 = jax.random.uniform(k3, (1, hidden_units), dtype, -bound2, bound2)
    b2 = jax.random.uniform(k4, (1,), dtype, -bound2, bound2)
    return w1, b1, w2, b2


if __name__ == "__main__":
    key = jax.random.PRNGKey(0)
    kx, kp = jax.random.split(key)

    # Small NCHW-style input consistent with Dense(ndim=(4, 16, 16)).
    B, C, Hh, Ww = 2, 4, 16, 16
    hidden_units = 32
    x = jax.random.normal(kx, (B, C, Hh, Ww), dtype=jnp.float32)

    w1, b1, w2, b2 = init_dense_params(kp, (C, Hh, Ww), hidden_units)

    # One-time layout prep (kept outside the per-call hot path).
    w1_t, b1_p, w2_p, b2_p = prepare_dense_params(w1, b1, w2, b2)

    # TODO(synk): dropout branch (p is not None and self.dropout) not implemented;
    # forward here corresponds to inference / p=None, matching the default call.
    out = dense_forward(x, w1_t, b1_p, w2_p, b2_p)
    out = jax.block_until_ready(out)

    # Cross-check against plain-JAX reference.
    x2d = x.reshape(B, -1)
    ref = (jnp.maximum(x2d @ w1.T + b1, 0.0) @ w2.T + b2)[:, 0]
    assert out.shape == (B,)
    assert jnp.allclose(out, ref, atol=1e-4, rtol=1e-4)

    print("KERNEL_OK")
</pallas_src>

<mosaic_0001>
module attributes {stable_mosaic.version = 11 : i64} {
  func.func @dense_kernel(%arg0: i32, %arg1: memref<8x1024xf32, #tpu.memory_space<vmem>>, %arg2: memref<1024x128xf32, #tpu.memory_space<vmem>>, %arg3: memref<1x128xf32, #tpu.memory_space<vmem>>, %arg4: memref<1x128xf32, #tpu.memory_space<vmem>>, %arg5: memref<1xf32, #tpu.memory_space<smem>>, %arg6: memref<8x1xf32, #tpu.memory_space<vmem>>) attributes {dimension_semantics = [#tpu.dimension_semantics<parallel>], iteration_bounds = array<i64: 1>, scalar_prefetch = 0 : i64, scratch_operands = 0 : i64, tpu.core_type = #tpu.core_type<tc>, window_params = [{transform_indices = @transform_0, window_bounds = array<i64: 8, 1024>}, {pipeline_mode = #tpu.pipeline_mode<synchronous>, transform_indices = @transform_1, window_bounds = array<i64: 1024, 128>}, {pipeline_mode = #tpu.pipeline_mode<synchronous>, transform_indices = @transform_2, window_bounds = array<i64: 1, 128>}, {pipeline_mode = #tpu.pipeline_mode<synchronous>, transform_indices = @transform_3, window_bounds = array<i64: 1, 128>}, {transform_indices = @transform_4, window_bounds = array<i64: 1>}, {transform_indices = @transform_5, window_bounds = array<i64: 8, 1>}]} {
    %c0 = arith.constant 0 : index
    %c0_0 = arith.constant 0 : index
    %0 = vector.load %arg1[%c0, %c0_0] : memref<8x1024xf32, #tpu.memory_space<vmem>>, vector<8x1024xf32>
    %c0_1 = arith.constant 0 : index
    %c0_2 = arith.constant 0 : index
    %1 = vector.load %arg2[%c0_1, %c0_2] : memref<1024x128xf32, #tpu.memory_space<vmem>>, vector<1024x128xf32>
    %cst = arith.constant dense<0.000000e+00> : vector<8x128xf32>
    %2 = tpu.matmul %0, %1, %cst {dimension_numbers = #tpu.dot_dimension_numbers<[1], [0], [0], [1], [0, 0, 1, 1], [], []>} : vector<8x1024xf32>, vector<1024x128xf32>, vector<8x128xf32> -> vector<8x128xf32>
    %c0_3 = arith.constant 0 : index
    %c0_4 = arith.constant 0 : index
    %3 = vector.load %arg3[%c0_3, %c0_4] : memref<1x128xf32, #tpu.memory_space<vmem>>, vector<1x128xf32>
    %4 = vector.broadcast %3 : vector<1x128xf32> to vector<8x128xf32>
    %5 = arith.addf %2, %4 : vector<8x128xf32>
    %cst_5 = arith.constant 0.000000e+00 : f32
    %6 = vector.broadcast %cst_5 : f32 to vector<8x128xf32>
    %7 = arith.maximumf %5, %6 : vector<8x128xf32>
    %c0_6 = arith.constant 0 : index
    %c0_7 = arith.constant 0 : index
    %8 = vector.load %arg4[%c0_6, %c0_7] : memref<1x128xf32, #tpu.memory_space<vmem>>, vector<1x128xf32>
    %9 = vector.broadcast %8 : vector<1x128xf32> to vector<8x128xf32>
    %10 = arith.mulf %7, %9 : vector<8x128xf32>
    %cst_8 = arith.constant dense<0.000000e+00> : vector<8xf32>
    %11 = vector.multi_reduction <add>, %10, %cst_8 [1] : vector<8x128xf32> to vector<8xf32>
    %12 = vector.shape_cast %11 : vector<8xf32> to vector<8x1xf32>
    %c0_9 = arith.constant 0 : index
    %13 = memref.load %arg5[%c0_9] : memref<1xf32, #tpu.memory_space<smem>>
    %14 = vector.broadcast %13 : f32 to vector<8x1xf32>
    %15 = arith.addf %12, %14 : vector<8x1xf32>
    %c0_10 = arith.constant 0 : index
    %c0_11 = arith.constant 0 : index
    %16 = vector.load %arg6[%c0_10, %c0_11] : memref<8x1xf32, #tpu.memory_space<vmem>>, vector<8x1xf32>
    tpu.vector_store %arg6[%c0_10, %c0_11], %15 {strides = array<i32>} : memref<8x1xf32, #tpu.memory_space<vmem>>, vector<8x1xf32>,
    return
  }
  func.func @transform_0(%arg0: i32) -> (i32, i32) {
    %c0_i32 = arith.constant 0 : i32
    %c0_i32_0 = arith.constant 0 : i32
    return %arg0, %c0_i32 : i32, i32
  }
  func.func @transform_1(%arg0: i32) -> (i32, i32) {
    %c0_i32 = arith.constant 0 : i32
    %c0_i32_0 = arith.constant 0 : i32
    %c0_i32_1 = arith.constant 0 : i32
    return %c0_i32, %c0_i32_0 : i32, i32
  }
  func.func @transform_2(%arg0: i32) -> (i32, i32) {
    %c0_i32 = arith.constant 0 : i32
    %c0_i32_0 = arith.constant 0 : i32
    %c0_i32_1 = arith.constant 0 : i32
    return %c0_i32, %c0_i32_0 : i32, i32
  }
  func.func @transform_3(%arg0: i32) -> (i32, i32) {
    %c0_i32 = arith.constant 0 : i32
    %c0_i32_0 = arith.constant 0 : i32
    %c0_i32_1 = arith.constant 0 : i32
    return %c0_i32, %c0_i32_0 : i32, i32
  }
  func.func @transform_4(%arg0: i32) -> i32 {
    %c0_i32 = arith.constant 0 : i32
    %c0_i32_0 = arith.constant 0 : i32
    return %c0_i32 : i32
  }
  func.func @transform_5(%arg0: i32) -> (i32, i32) {
    %c0_i32 = arith.constant 0 : i32
    %c0_i32_0 = arith.constant 0 : i32
    return %arg0, %c0_i32 : i32, i32
  }
}

</mosaic_0001>

<bundles_post_ra>
// kernel: tpu_custom_call.1
= control target key start
LH: loop header
LB: loop body
LE: loop exit
PB: predicated region body
PF: predicated region fallthrough
CT: control target
= control target key end

     0   :  { %11 = vsyncpa [#allocation4], 0  ;;  %s734_s0 = inlined_call_operand.hbm [shape: f32[8,1024], index: 0, kind: input, shape index: {}]   ;;  %s735_s1 = inlined_call_operand.hbm [shape: f32[1024,128], index: 1, kind: input, shape index: {}]   ;;  %s736_s2 = inlined_call_operand.vmem [shape: f32[1,128], index: 2, kind: input, shape index: {}]   ;;  %s737_s3 = inlined_call_operand.vmem [shape: f32[1,128], index: 3, kind: input, shape index: {}]   ;;  %s738_s4 = inlined_call_operand.<no memory space> [shape: f32[1], index: 4, kind: input, shape index: {}]   ;;  %s739_s5 = inlined_call_operand.vmem [shape: f32[8,1], index: 5, kind: output, shape index: {}]  }
   0x1   :  { %12 = vsyncpa [#allocation6], 0  ;;  %s682_s18 = smov [#allocation3]   ;;  %s683_s20 = smov [#allocation5]  }
   0x2   :  { %s19_s19 = sshll.u32 %s682_s18, 4  ;;  %s28_s21 = sshll.u32 %s683_s20, 4  ;;  %s20_s19 = int_to_ptr.vmem [resolvable:$true] %s19_s19  ;;  %s29_s21 = int_to_ptr.vmem [resolvable:$true] %s28_s21 }
   0x3   :  { %s646_s22 = scalar_lea.vmem %s20_s19, 1024  ;;  %p651_p1 = scmp.lt.s32.totalorder %s20_s19, %s20_s19 }
   0x4   :  { %p647_p0 = scmp.ne.s32.totalorder %s20_s19, %s646_s22  ;;  %p652_p2 = scmp.lt.s32.totalorder %s646_s22, %s646_s22 }
   0x6   :  { %p653_p3 = por %p652_p2, %p651_p1 }
   0x8   :  { %p654_p4 = pnand %p653_p3, %p647_p0 }
   0xa   :  { %657 = shalt.err (!%p654_p4)
}
   0xb   :  { %22 = dma.hbm_to_vmem [thread:$0]  %s734_s0, 1024, %s20_s19, [#allocation4]  }
   0xc   :  { %s666_s25 = scalar_lea.vmem %s29_s21, 16384  ;;  %p671_p6 = scmp.lt.s32.totalorder %s29_s21, %s29_s21 }
   0xd   :  { %p667_p5 = scmp.ne.s32.totalorder %s29_s21, %s666_s25  ;;  %p672_p7 = scmp.lt.s32.totalorder %s666_s25, %s666_s25 }
   0xf   :  { %p673_p8 = por %p672_p7, %p671_p6 }
  0x11   :  { %p674_p9 = pnand %p673_p8, %p667_p5 }
  0x13   :  { %677 = shalt.err (!%p674_p9)
}
  0x14   :  { %s684_s26 = smov 128   ;;  %s685_s27 = smov 8  }
  0x15   :  { %34 = dma.hbm_to_vmem [thread:$0]  %s735_s1, 16384, %s29_s21, [#allocation6], %s684_s26, %s684_s26, %s685_s27  }
  0x16   :  { %678 = dma.done.wait [#allocation4], 1024  }
  0x17   :  { %679 = vsyncadd [#allocation4], 4294966272 }
  0x18   :  { %680 = dma.done.wait [#allocation6], 16384  }
  0x19   :  { %681 = vsyncadd [#allocation6], 4294950912  ;;  %v86_v0 = vld [vmem:[#allocation5 + $0xf8] sm:$0xff]  ;;  %v85_v4 = vld [vmem:[#allocation5 + $0xf0] sm:$0xff]  ;;  %vm484_vm0 = vcmask 7168  }
  0x1a   :  { %v118_v1 = vld [vmem:[#allocation5 + $0x1f8] sm:$0xff]  ;;  %494 = vmatprep.subr.mxu0 %v86_v0  ;;  %v117_v5 = vld [vmem:[#allocation5 + $0x1f0] sm:$0xff]  ;;  %v84_v8 = vld [vmem:[#allocation5 + $0xe8] sm:$0xff] }
  0x1b   :  { %v70_v2 = vld [vmem:[#allocation5 + $0x78] sm:$0xff]  ;;  %529 = vmatprep.subr.mxu1 %v118_v1  ;;  %v69_v6 = vld [vmem:[#allocation5 + $0x70] sm:$0xff]  ;;  %v116_v9 = vld [vmem:[#allocation5 + $0x1e8] sm:$0xff] }
  0x1c   :  { %v102_v3 = vld [vmem:[#allocation5 + $0x178] sm:$0xff]  ;;  %495 = vmatpush3.msra.mxu0 %v70_v2  ;;  %v101_v7 = vld [vmem:[#allocation5 + $0x170] sm:$0xff]  ;;  %v68_v10 = vld [vmem:[#allocation5 + $0x68] sm:$0xff] }
  0x1d   :  { %530 = vmatpush3.msra.mxu1 %v102_v3  ;;  %496 = vmatprep.subr.mxu0 %v85_v4  ;;  %v100_v11 = vld [vmem:[#allocation5 + $0x168] sm:$0xff]  ;;  %v83_v12 = vld [vmem:[#allocation5 + $0xe0] sm:$0xff]  ;;  %v82_v16 = vld [vmem:[#allocation5 + $0xd8] sm:$0xff] }
  0x1e   :  { %531 = vmatprep.subr.mxu1 %v117_v5  ;;  %497 = vmatpush3.msra.mxu0 %v69_v6  ;;  %v115_v13 = vld [vmem:[#allocation5 + $0x1e0] sm:$0xff]  ;;  %v114_v17 = vld [vmem:[#allocation5 + $0x1d8] sm:$0xff]  ;;  %v81_v20 = vld [vmem:[#allocation5 + $0xd0] sm:$0xff] }
  0x1f   :  { %532 = vmatpush3.msra.mxu1 %v101_v7  ;;  %498 = vmatprep.subr.mxu0 %v84_v8  ;;  %v67_v14 = vld [vmem:[#allocation5 + $0x60] sm:$0xff]  ;;  %v66_v18 = vld [vmem:[#allocation5 + $0x58] sm:$0xff]  ;;  %v113_v21 = vld [vmem:[#allocation5 + $0x1d0] sm:$0xff] }
  0x20   :  { %533 = vmatprep.subr.mxu1 %v116_v9  ;;  %v99_v15 = vld [vmem:[#allocation5 + $0x160] sm:$0xff]  ;;  %499 = vmatpush3.msra.mxu0 %v68_v10  ;;  %v98_v19 = vld [vmem:[#allocation5 + $0x158] sm:$0xff]  ;;  %v65_v22 = vld [vmem:[#allocation5 + $0x50] sm:$0xff] }
  0x21   :  { %534 = vmatpush3.msra.mxu1 %v100_v11  ;;  %500 = vmatprep.subr.mxu0 %v83_v12  ;;  %v97_v23 = vld [vmem:[#allocation5 + $0x150] sm:$0xff]  ;;  %v80_v24 = vld [vmem:[#allocation5 + $0xc8] sm:$0xff]  ;;  %v79_v28 = vld [vmem:[#allocation5 + $0xc0] sm:$0xff] }
  0x22   :  { %535 = vmatprep.subr.mxu1 %v115_v13  ;;  %501 = vmatpush3.msra.mxu0 %v67_v14  ;;  %v112_v25 = vld [vmem:[#allocation5 + $0x1c8] sm:$0xff]  ;;  %v111_v29 = vld [vmem:[#allocation5 + $0x1c0] sm:$0xff]  ;;  %v78_v32 = vld [vmem:[#allocation5 + $0xb8] sm:$0xff] }
  0x23   :  { %536 = vmatpush3.msra.mxu1 %v99_v15  ;;  %502 = vmatprep.subr.mxu0 %v82_v16  ;;  %v64_v26 = vld [vmem:[#allocation5 + $0x48] sm:$0xff]  ;;  %v63_v30 = vld [vmem:[#allocation5 + $0x40] sm:$0xff]  ;;  %v110_v33 = vld [vmem:[#allocation5 + $0x1b8] sm:$0xff] }
  0x24   :  { %537 = vmatprep.subr.mxu1 %v114_v17  ;;  %503 = vmatpush3.msra.mxu0 %v66_v18  ;;  %v96_v27 = vld [vmem:[#allocation5 + $0x148] sm:$0xff]  ;;  %v95_v31 = vld [vmem:[#allocation5 + $0x140] sm:$0xff]  ;;  %v62_v34 = vld [vmem:[#allocation5 + $0x38] sm:$0xff] }
  0x25   :  { %538 = vmatpush3.msra.mxu1 %v98_v19  ;;  %504 = vmatprep.subr.mxu0 %v81_v20  ;;  %v94_v35 = vld [vmem:[#allocation5 + $0x138] sm:$0xff]  ;;  %v77_v36 = vld [vmem:[#allocation5 + $0xb0] sm:$0xff]  ;;  %v76_v40 = vld [vmem:[#allocation5 + $0xa8] sm:$0xff] }
  0x26   :  { %539 = vmatprep.subr.mxu1 %v113_v21  ;;  %505 = vmatpush3.msra.mxu0 %v65_v22  ;;  %v109_v37 = vld [vmem:[#allocation5 + $0x1b0] sm:$0xff]  ;;  %v108_v41 = vld [vmem:[#allocation5 + $0x1a8] sm:$0xff]  ;;  %v75_v44 = vld [vmem:[#allocation5 + $0xa0] sm:$0xff] }
  0x27   :  { %540 = vmatpush3.msra.mxu1 %v97_v23  ;;  %506 = vmatprep.subr.mxu0 %v80_v24  ;;  %v61_v38 = vld [vmem:[#allocation5 + $0x30] sm:$0xff]  ;;  %v60_v42 = vld [vmem:[#allocation5 + $0x28] sm:$0xff]  ;;  %v107_v45 = vld [vmem:[#allocation5 + $0x1a0] sm:$0xff] }
  0x28   :  { %541 = vmatprep.subr.mxu1 %v112_v25  ;;  %507 = vmatpush3.msra.mxu0 %v64_v26  ;;  %v93_v39 = vld [vmem:[#allocation5 + $0x130] sm:$0xff]  ;;  %v92_v43 = vld [vmem:[#allocation5 + $0x128] sm:$0xff]  ;;  %v59_v46 = vld [vmem:[#allocation5 + $0x20] sm:$0xff] }
  0x29   :  { %542 = vmatpush3.msra.mxu1 %v96_v27  ;;  %508 = vmatprep.subr.mxu0 %v79_v28  ;;  %v91_v47 = vld [vmem:[#allocation5 + $0x120] sm:$0xff]  ;;  %v74_v48 = vld [vmem:[#allocation5 + $0x98] sm:$0xff]  ;;  %v73_v52 = vld [vmem:[#allocation5 + $0x90] sm:$0xff] }
  0x2a   :  { %543 = vmatprep.subr.mxu1 %v111_v29  ;;  %509 = vmatpush3.msra.mxu0 %v63_v30  ;;  %v106_v49 = vld [vmem:[#allocation5 + $0x198] sm:$0xff]  ;;  %v105_v53 = vld [vmem:[#allocation5 + $0x190] sm:$0xff]  ;;  %v72_v56 = vld [vmem:[#allocation5 + $0x88] sm:$0xff] }
  0x2b   :  { %544 = vmatpush3.msra.mxu1 %v95_v31  ;;  %510 = vmatprep.subr.mxu0 %v78_v32  ;;  %v58_v50 = vld [vmem:[#allocation5 + $0x18] sm:$0xff]  ;;  %v57_v54 = vld [vmem:[#allocation5 + $0x10] sm:$0xff]  ;;  %v104_v57 = vld [vmem:[#allocation5 + $0x188] sm:$0xff] }
  0x2c   :  { %545 = vmatprep.subr.mxu1 %v110_v33  ;;  %511 = vmatpush3.msra.mxu0 %v62_v34  ;;  %v90_v51 = vld [vmem:[#allocation5 + $0x118] sm:$0xff]  ;;  %v89_v55 = vld [vmem:[#allocation5 + $0x110] sm:$0xff]  ;;  %v56_v58 = vld [vmem:[#allocation5 + $0x8] sm:$0xff] }
  0x2d   :  { %546 = vmatpush3.msra.mxu1 %v94_v35  ;;  %512 = vmatprep.subr.mxu0 %v77_v36  ;;  %v88_v59 = vld [vmem:[#allocation5 + $0x108] sm:$0xff]  ;;  %v71_v60 = vld [vmem:[#allocation5 + $0x80] sm:$0xff]  ;;  %v50_v2 = vld [vmem:[#allocation3 + $0x18] sm:$0xff] }
  0x2e   :  { %547 = vmatprep.subr.mxu1 %v109_v37  ;;  %513 = vmatpush3.msra.mxu0 %v61_v38  ;;  %v103_v61 = vld [vmem:[#allocation5 + $0x180] sm:$0xff]  ;;  %v48_v63 = vld [vmem:[#allocation3 + $0x8] sm:$0xff]  ;;  %v150_v3 = vld [vmem:[#allocation5 + $0x2f8] sm:$0xff] }
  0x2f   :  { %548 = vmatpush3.msra.mxu1 %v93_v39  ;;  %514 = vmatprep.subr.mxu0 %v76_v40  ;;  %v55_v62 = vld [vmem:[#allocation5] sm:$0xff]  ;;  %v182_v4 = vld [vmem:[#allocation5 + $0x3f8] sm:$0xff]  ;;  %v49_v5 = vld [vmem:[#allocation3 + $0x10] sm:$0xff] }
  0x30   :  { %549 = vmatprep.subr.mxu1 %v108_v41  ;;  %515 = vmatpush3.msra.mxu0 %v60_v42  ;;  %v87_v0 = vld [vmem:[#allocation5 + $0x100] sm:$0xff]  ;;  %v134_v6 = vld [vmem:[#allocation5 + $0x278] sm:$0xff]  ;;  %v149_v8 = vld [vmem:[#allocation5 + $0x2f0] sm:$0xff] }
  0x31   :  { %550 = vmatpush3.msra.mxu1 %v92_v43  ;;  %516 = vmatprep.subr.mxu0 %v75_v44  ;;  %v47_v1 = vld [vmem:[#allocation3] sm:$0xff]  ;;  %v166_v7 = vld [vmem:[#allocation5 + $0x378] sm:$0xff]  ;;  %v181_v9 = vld [vmem:[#allocation5 + $0x3f0] sm:$0xff] }
  0x32   :  { %551 = vmatprep.subr.mxu1 %v107_v45  ;;  %517 = vmatpush3.msra.mxu0 %v59_v46  ;;  %v133_v10 = vld [vmem:[#allocation5 + $0x270] sm:$0xff]  ;;  %v148_v12 = vld [vmem:[#allocation5 + $0x2e8] sm:$0xff]  ;;  %v147_v16 = vld [vmem:[#allocation5 + $0x2e0] sm:$0xff] }
  0x33   :  { %552 = vmatpush3.msra.mxu1 %v91_v47  ;;  %518 = vmatprep.subr.mxu0 %v74_v48  ;;  %v165_v11 = vld [vmem:[#allocation5 + $0x370] sm:$0xff]  ;;  %v180_v13 = vld [vmem:[#allocation5 + $0x3e8] sm:$0xff]  ;;  %v179_v17 = vld [vmem:[#allocation5 + $0x3e0] sm:$0xff] }
  0x34   :  { %553 = vmatprep.subr.mxu1 %v106_v49  ;;  %519 = vmatpush3.msra.mxu0 %v58_v50  ;;  %v132_v14 = vld [vmem:[#allocation5 + $0x268] sm:$0xff]  ;;  %v131_v18 = vld [vmem:[#allocation5 + $0x260] sm:$0xff]  ;;  %v146_v20 = vld [vmem:[#allocation5 + $0x2d8] sm:$0xff] }
  0x35   :  { %554 = vmatpush3.msra.mxu1 %v90_v51  ;;  %520 = vmatprep.subr.mxu0 %v73_v52  ;;  %v164_v15 = vld [vmem:[#allocation5 + $0x368] sm:$0xff]  ;;  %v163_v19 = vld [vmem:[#allocation5 + $0x360] sm:$0xff]  ;;  %v178_v21 = vld [vmem:[#allocation5 + $0x3d8] sm:$0xff] }
  0x36   :  { %555 = vmatprep.subr.mxu1 %v105_v53  ;;  %521 = vmatpush3.msra.mxu0 %v57_v54  ;;  %v130_v22 = vld [vmem:[#allocation5 + $0x258] sm:$0xff]  ;;  %v145_v24 = vld [vmem:[#allocation5 + $0x2d0] sm:$0xff]  ;;  %v144_v28 = vld [vmem:[#allocation5 + $0x2c8] sm:$0xff] }
  0x37   :  { %556 = vmatpush3.msra.mxu1 %v89_v55  ;;  %522 = vmatprep.subr.mxu0 %v72_v56  ;;  %v162_v23 = vld [vmem:[#allocation5 + $0x358] sm:$0xff]  ;;  %v177_v25 = vld [vmem:[#allocation5 + $0x3d0] sm:$0xff]  ;;  %v176_v29 = vld [vmem:[#allocation5 + $0x3c8] sm:$0xff] }
  0x38   :  { %557 = vmatprep.subr.mxu1 %v104_v57  ;;  %523 = vmatpush3.msra.mxu0 %v56_v58  ;;  %v129_v26 = vld [vmem:[#allocation5 + $0x250] sm:$0xff]  ;;  %v128_v30 = vld [vmem:[#allocation5 + $0x248] sm:$0xff]  ;;  %v143_v32 = vld [vmem:[#allocation5 + $0x2c0] sm:$0xff] }
  0x39   :  { %558 = vmatpush3.msra.mxu1 %v88_v59  ;;  %524 = vmatprep.subr.mxu0 %v71_v60  ;;  %v161_v27 = vld [vmem:[#allocation5 + $0x350] sm:$0xff]  ;;  %v160_v31 = vld [vmem:[#allocation5 + $0x348] sm:$0xff]  ;;  %v175_v33 = vld [vmem:[#allocation5 + $0x3c0] sm:$0xff] }
  0x3a   :  { %559 = vmatprep.subr.mxu1 %v103_v61  ;;  %525 = vmatpush3.msra.mxu0 %v55_v62  ;;  %v127_v34 = vld [vmem:[#allocation5 + $0x240] sm:$0xff]  ;;  %v142_v36 = vld [vmem:[#allocation5 + $0x2b8] sm:$0xff]  ;;  %v141_v40 = vld [vmem:[#allocation5 + $0x2b0] sm:$0xff] }
  0x3b   :  { %254 = vmatprep.mubr.f32.mxu0 %v48_v63  ;;  %560 = vmatpush3.msra.mxu1 %v87_v0  ;;  %v159_v35 = vld [vmem:[#allocation5 + $0x340] sm:$0xff]  ;;  %v174_v37 = vld [vmem:[#allocation5 + $0x3b8] sm:$0xff]  ;;  %v173_v41 = vld [vmem:[#allocation5 + $0x3b0] sm:$0xff] }
  0x3c   :  { %255 = vmatmul.mubr.f32.vlgmr.msra.gmra.mxu0 %v47_v1  ;;  %324 = vmatprep.mubr.f32.mxu1 %v50_v2  ;;  %v126_v38 = vld [vmem:[#allocation5 + $0x238] sm:$0xff]  ;;  %v125_v42 = vld [vmem:[#allocation5 + $0x230] sm:$0xff]  ;;  %v140_v44 = vld [vmem:[#allocation5 + $0x2a8] sm:$0xff] }
  0x3d   :  { %564 = vmatprep.subr.mxu0 %v150_v3  ;;  %599 = vmatprep.subr.mxu1 %v182_v4  ;;  %v158_v39 = vld [vmem:[#allocation5 + $0x338] sm:$0xff]  ;;  %v157_v43 = vld [vmem:[#allocation5 + $0x330] sm:$0xff]  ;;  %v172_v45 = vld [vmem:[#allocation5 + $0x3a8] sm:$0xff] }
  0x3e   :  { %325 = vmatmul.mubr.f32.vlgmr.msra.gmra.mxu1 %v49_v5  ;;  %565 = vmatpush3.msra.mxu0 %v134_v6  ;;  %v124_v46 = vld [vmem:[#allocation5 + $0x228] sm:$0xff]  ;;  %v139_v48 = vld [vmem:[#allocation5 + $0x2a0] sm:$0xff]  ;;  %v138_v52 = vld [vmem:[#allocation5 + $0x298] sm:$0xff] }
  0x3f   :  { %600 = vmatpush3.msra.mxu1 %v166_v7  ;;  %566 = vmatprep.subr.mxu0 %v149_v8  ;;  %v156_v47 = vld [vmem:[#allocation5 + $0x328] sm:$0xff]  ;;  %v171_v49 = vld [vmem:[#allocation5 + $0x3a0] sm:$0xff]  ;;  %v170_v53 = vld [vmem:[#allocation5 + $0x398] sm:$0xff] }
  0x40   :  { %601 = vmatprep.subr.mxu1 %v181_v9  ;;  %567 = vmatpush3.msra.mxu0 %v133_v10  ;;  %v123_v50 = vld [vmem:[#allocation5 + $0x220] sm:$0xff]  ;;  %v122_v54 = vld [vmem:[#allocation5 + $0x218] sm:$0xff]  ;;  %v137_v56 = vld [vmem:[#allocation5 + $0x290] sm:$0xff] }
  0x41   :  { %602 = vmatpush3.msra.mxu1 %v165_v11  ;;  %568 = vmatprep.subr.mxu0 %v148_v12  ;;  %v155_v51 = vld [vmem:[#allocation5 + $0x320] sm:$0xff]  ;;  %v154_v55 = vld [vmem:[#allocation5 + $0x318] sm:$0xff]  ;;  %v169_v57 = vld [vmem:[#allocation5 + $0x390] sm:$0xff] }
  0x42   :  { %603 = vmatprep.subr.mxu1 %v180_v13  ;;  %569 = vmatpush3.msra.mxu0 %v132_v14  ;;  %v121_v58 = vld [vmem:[#allocation5 + $0x210] sm:$0xff]  ;;  %v136_v60 = vld [vmem:[#allocation5 + $0x288] sm:$0xff]  ;;  %v135_v0 = vld [vmem:[#allocation5 + $0x280] sm:$0xff] }
  0x43   :  { %604 = vmatpush3.msra.mxu1 %v164_v15  ;;  %570 = vmatprep.subr.mxu0 %v147_v16  ;;  %v153_v59 = vld [vmem:[#allocation5 + $0x310] sm:$0xff]  ;;  %v168_v61 = vld [vmem:[#allocation5 + $0x388] sm:$0xff]  ;;  %v167_v1 = vld [vmem:[#allocation5 + $0x380] sm:$0xff] }
  0x44   :  { %605 = vmatprep.subr.mxu1 %v179_v17  ;;  %571 = vmatpush3.msra.mxu0 %v131_v18  ;;  %v120_v62 = vld [vmem:[#allocation5 + $0x208] sm:$0xff]  ;;  %v119_v2 = vld [vmem:[#allocation5 + $0x200] sm:$0xff]  ;;  %v54_v5 = vld [vmem:[#allocation3 + $0x38] sm:$0xff] }
  0x45   :  { %606 = vmatpush3.msra.mxu1 %v163_v19  ;;  %572 = vmatprep.subr.mxu0 %v146_v20  ;;  %v152_v63 = vld [vmem:[#allocation5 + $0x308] sm:$0xff]  ;;  %v151_v4 = vld [vmem:[#allocation5 + $0x300] sm:$0xff]  ;;  %v53_v7 = vld [vmem:[#allocation3 + $0x30] sm:$0xff] }
  0x46   :  { %607 = vmatprep.subr.mxu1 %v178_v21  ;;  %573 = vmatpush3.msra.mxu0 %v130_v22  ;;  %v52_v3 = vld [vmem:[#allocation3 + $0x28] sm:$0xff]  ;;  %v51_v6 = vld [vmem:[#allocation3 + $0x20] sm:$0xff] }
  0x47   :  { %608 = vmatpush3.msra.mxu1 %v162_v23  ;;  %574 = vmatprep.subr.mxu0 %v145_v24  ;;  %v492_v12 = vld [vmem:[%s736_s2] ss:$0 sm:$0xff] }
  0x48   :  { %609 = vmatprep.subr.mxu1 %v177_v25  ;;  %575 = vmatpush3.msra.mxu0 %v129_v26  ;;  %v493_v25 = vld [vmem:[%s737_s3] ss:$0 sm:$0xff] }
  0x49   :  { %610 = vmatpush3.msra.mxu1 %v161_v27  ;;  %576 = vmatprep.subr.mxu0 %v144_v28  ;;  %v482_v28 = vstv %s738_s4 }
  0x4a   :  { %611 = vmatprep.subr.mxu1 %v176_v29  ;;  %577 = vmatpush3.msra.mxu0 %v128_v30 }
  0x4b   :  { %612 = vmatpush3.msra.mxu1 %v160_v31  ;;  %578 = vmatprep.subr.mxu0 %v143_v32 }
  0x4c   :  { %613 = vmatprep.subr.mxu1 %v175_v33  ;;  %579 = vmatpush3.msra.mxu0 %v127_v34 }
  0x4d   :  { %614 = vmatpush3.msra.mxu1 %v159_v35  ;;  %580 = vmatprep.subr.mxu0 %v142_v36 }
  0x4e   :  { %615 = vmatprep.subr.mxu1 %v174_v37  ;;  %581 = vmatpush3.msra.mxu0 %v126_v38 }
  0x4f   :  { %616 = vmatpush3.msra.mxu1 %v158_v39  ;;  %582 = vmatprep.subr.mxu0 %v141_v40 }
  0x50   :  { %617 = vmatprep.subr.mxu1 %v173_v41  ;;  %583 = vmatpush3.msra.mxu0 %v125_v42 }
  0x51   :  { %618 = vmatpush3.msra.mxu1 %v157_v43  ;;  %584 = vmatprep.subr.mxu0 %v140_v44 }
  0x52   :  { %619 = vmatprep.subr.mxu1 %v172_v45  ;;  %585 = vmatpush3.msra.mxu0 %v124_v46 }
  0x53   :  { %620 = vmatpush3.msra.mxu1 %v156_v47  ;;  %586 = vmatprep.subr.mxu0 %v139_v48 }
  0x54   :  { %621 = vmatprep.subr.mxu1 %v171_v49  ;;  %587 = vmatpush3.msra.mxu0 %v123_v50 }
  0x55   :  { %622 = vmatpush3.msra.mxu1 %v155_v51  ;;  %588 = vmatprep.subr.mxu0 %v138_v52 }
  0x56   :  { %623 = vmatprep.subr.mxu1 %v170_v53  ;;  %589 = vmatpush3.msra.mxu0 %v122_v54 }
  0x57   :  { %624 = vmatpush3.msra.mxu1 %v154_v55  ;;  %590 = vmatprep.subr.mxu0 %v137_v56 }
  0x58   :  { %625 = vmatprep.subr.mxu1 %v169_v57  ;;  %591 = vmatpush3.msra.mxu0 %v121_v58 }
  0x59   :  { %626 = vmatpush3.msra.mxu1 %v153_v59  ;;  %592 = vmatprep.subr.mxu0 %v136_v60 }
  0x5a   :  { %627 = vmatprep.subr.mxu1 %v168_v61  ;;  %593 = vmatpush3.msra.mxu0 %v120_v62 }
  0x5b   :  { %628 = vmatpush3.msra.mxu1 %v152_v63  ;;  %594 = vmatprep.subr.mxu0 %v135_v0 }
  0x5c   :  { %629 = vmatprep.subr.mxu1 %v167_v1  ;;  %595 = vmatpush3.msra.mxu0 %v119_v2 }
  0x5d   :  { %394 = vmatprep.mubr.f32.mxu0 %v52_v3  ;;  %630 = vmatpush3.msra.mxu1 %v151_v4 }
  0x5e   :  { %464 = vmatprep.mubr.f32.mxu1 %v54_v5  ;;  %395 = vmatmul.mubr.f32.vlgmr.msra.gmra.mxu0 %v51_v6 }
  0x5f   :  { %465 = vmatmul.mubr.f32.vlgmr.msra.gmra.mxu1 %v53_v7 }
  0xfc   :  { %v526_v8 = vpop.f32.mrf.mxu0 }
  0xfe   :  { %v561_v9 = vpop.f32.mrf.mxu1  ;;  %v527_v10 = vpop.f32.mrf.mxu0 }
  0xff   :  { %v528_v11 = vadd.f32 %v527_v10, %v526_v8 }
 0x100   :  { %v562_v13 = vpop.f32.mrf.mxu1 }
 0x101   :  { %v257_v14 = vadd.f32 %v528_v11, %v492_v12  ;;  %v563_v15 = vadd.f32 %v562_v13, %v561_v9 }
 0x103   :  { %v327_v20 = vadd.f32 %v563_v15, %v257_v14 }
 0x11e   :  { %v596_v16 = vpop.f32.mrf.mxu0 }
 0x11f   :  { %v631_v17 = vpop.f32.mrf.mxu1 }
 0x120   :  { %v597_v18 = vpop.f32.mrf.mxu0 }
 0x121   :  { %v632_v19 = vpop.f32.mrf.mxu1  ;;  %v598_v21 = vadd.f32 %v597_v18, %v596_v16 }
 0x122   :  { %v633_v23 = vadd.f32 %v632_v19, %v631_v17 }
 0x123   :  { %v397_v22 = vadd.f32 %v598_v21, %v327_v20 }
 0x125   :  { %v467_v24 = vadd.f32 %v633_v23, %v397_v22 }
 0x127   :  { %v470_v26 = vmax.f32 %v467_v24, 0.0 }
 0x129   :  { %v478_v27 = vmul.f32 %v493_v25, %v470_v26 }
 0x12b   :  { %479 = vadd.xlane.f32.xlu0 %v478_v27 }
 0x1b4   :  { %v480_v29 = vpop.xlane.xlu0 %479 }
 0x1b5   :  { %v483_v30 = vadd.f32 %v482_v28, %v480_v29 }
 0x1b7   :  { %485 = vst.msk [vmem:[%s739_s5] sm:$0xff] %vm484_vm0, %v483_v30 }
 0x1b8   :  { %490 = vsyncpa [#allocation4], 1 }
 0x1b9   :  { %491 = vsyncpa [#allocation6], 1 }

</bundles_post_ra>
